<compile_context>
chip_gen: v7x
topology: tpu7x:2x2x1
jax: 0.10.0
libtpu: 0.0.40
codegen_flags: <defaults>
</compile_context>

<pallas_src>
import functools

import jax
import jax.numpy as jnp
from jax.experimental import pallas as pl
from jax.experimental.pallas import tpu as pltpu


def _round_up(n, m):
    return ((n + m - 1) // m) * m


def _policy_mlp_kernel(x_ref, w1_ref, b1_ref, w2_ref, b2_ref, w3_ref, b3_ref,
                       out_ref, *, act_dim):
    """out = head(relu(relu(x@W1+b1)@W2+b2)) with softplus fused on std cols.

    W3 = [Wmean | Wstd | 0-pad]; columns [act_dim, 2*act_dim) get softplus.
    """
    x = x_ref[...]                                                     # (TB, D) bf16

    h1 = jnp.dot(x, w1_ref[...],
                 preferred_element_type=jnp.float32) + b1_ref[...]     # (TB, Hp) f32
    h1 = jnp.maximum(h1, 0.0)

    h2 = jnp.dot(h1.astype(jnp.bfloat16), w2_ref[...],
                 preferred_element_type=jnp.float32) + b2_ref[...]     # (TB, Hp) f32
    h2 = jnp.maximum(h2, 0.0)

    head = (jnp.dot(h2.astype(jnp.bfloat16), w3_ref[...],
                    preferred_element_type=jnp.float32)
            + b3_ref[...])                                             # (TB, OUT_PAD)

    # Fused, numerically-stable softplus on the std columns only.
    col = jax.lax.broadcasted_iota(jnp.int32, head.shape, 1)
    std_mask = (col >= act_dim) & (col < 2 * act_dim)
    softplus = jnp.maximum(head, 0.0) + jnp.log(1.0 + jnp.exp(-jnp.abs(head)))
    head = jnp.where(std_mask, softplus, head)

    out_ref[...] = head.astype(out_ref.dtype)                          # bf16 store


def policy_heads(x, params, *, tile_batch=2048):
    """Fused MLP; returns the lane-padded (B, OUT_PAD) head block (bf16).

    Columns [0:A]      -> action means
    Columns [A:2A]     -> softplus(std_layer output)
    Columns [2A:]      -> zero padding (sliced off by the caller)
    """
    B, D = x.shape
    A = params["output_dim"]
    h_pad = params["w1"].shape[1]
    out_pad = params["w3"].shape[1]

    # Tile selection: whole (padded) batch in one step when small; for large
    # batches keep big tiles, and split single-step large batches in two so
    # the "parallel" axis can shard across v7x's two TensorCores.
    tb = _round_up(min(tile_batch, _round_up(B, 16)), 16)
    if B >= 1024 and _round_up(B, tb) // tb == 1:
        tb = _round_up(-(-tb // 2), 16)
    b_pad = _round_up(B, tb)

    x_bf16 = x.astype(jnp.bfloat16)
    if b_pad != B:
        x_bf16 = jnp.pad(x_bf16, ((0, b_pad - B), (0, 0)))

    grid = (b_pad // tb,)

    w1, b1 = params["w1"], params["b1"]
    w2, b2 = params["w2"], params["b2"]
    w3, b3 = params["w3"], params["b3"]

    cost = pl.CostEstimate(
        flops=2 * b_pad * (D * h_pad + h_pad * h_pad + h_pad * out_pad),
        transcendentals=2 * b_pad * out_pad,   # exp + log in fused softplus
        bytes_accessed=(x_bf16.size * 2 + w1.size * 2 + w2.size * 2 + w3.size * 2
                        + b1.size * 4 + b2.size * 4 + b3.size * 4
                        + b_pad * out_pad * 2),
    )

    kernel = functools.partial(_policy_mlp_kernel, act_dim=A)

    out = pl.pallas_call(
        kernel,
        out_shape=jax.ShapeDtypeStruct((b_pad, out_pad), jnp.bfloat16),
        grid_spec=pltpu.PrefetchScalarGridSpec(
            num_scalar_prefetch=0,
            grid=grid,
            in_specs=[
                pl.BlockSpec((tb, D), lambda i: (i, 0)),          # x: batch-tiled
                pl.BlockSpec((D, h_pad), lambda i: (0, 0)),       # W1: VMEM-resident
                pl.BlockSpec((1, h_pad), lambda i: (0, 0)),       # b1
                pl.BlockSpec((h_pad, h_pad), lambda i: (0, 0)),   # W2
                pl.BlockSpec((1, h_pad), lambda i: (0, 0)),       # b2
                pl.BlockSpec((h_pad, out_pad), lambda i: (0, 0)),  # W3 (mean|std|pad)
                pl.BlockSpec((1, out_pad), lambda i: (0, 0)),      # b3
            ],
            out_specs=pl.BlockSpec((tb, out_pad), lambda i: (i, 0)),
        ),
        compiler_params=pltpu.CompilerParams(
            dimension_semantics=("parallel",),
            vmem_limit_bytes=32 * 1024 * 1024,
        ),
        cost_estimate=cost,
    )(x_bf16, w1, b1, w2, b2, w3, b3)

    return out[:B]


def policy_forward(x, params, *, training=False, key=None, eps=1e-6):
    """Mirror PolicyNetworkContinuous.forward semantics.

    training=True  -> (actions, log_probs) sampled from Normal(means+eps, stds+eps)
    training=False -> action means

    Note: weights/activations are bf16 MXU operands (f32 accumulation), so
    results deviate from PyTorch f32 Linear numerics at ~1e-2 relative level,
    which is acceptable for RL use.
    """
    A = params["output_dim"]
    head = policy_heads(x, params).astype(jnp.float32)
    means = head[:, :A]
    if not training:
        return means

    mu = means + eps
    sigma = head[:, A:2 * A] + eps                      # softplus fused in-kernel
    if key is None:
        key = jax.random.PRNGKey(0)
    # TODO(synk): sampling/log_prob kept as thin JAX glue (needs a PRNG key);
    # could be fused via pltpu.prng_seed/prng_random_bits if ever hot.
    z = jax.random.normal(key, mu.shape, jnp.float32)
    actions = mu + sigma * z                            # Normal(mu, sigma).sample()
    log_probs = (-0.5 * z * z - jnp.log(sigma)
                 - 0.5 * jnp.log(2.0 * jnp.pi))         # Normal.log_prob(actions)
    return actions, log_probs


def init_params(key, input_dim, hidden_dim, output_dim):
    """Torch-Linear-style init; weights stored transposed (in, out), bf16,
    lane-dense padded.

      hidden dim padded to H_PAD = round_up(hidden_dim, 128)
      head width padded to OUT_PAD = round_up(2*output_dim, 128):
        w3[:, 0:A] = mean weights, w3[:, A:2A] = std weights, rest zero
        b3[:, 0:A] = mean bias,    b3[:, A:2A] = std bias,    rest zero
    """
    h_pad = _round_up(hidden_dim, 128)
    out_pad = _round_up(2 * output_dim, 128)
    ks = jax.random.split(key, 8)

    def lin(kw, kb, fan_in, fan_out):
        bound = 1.0 / jnp.sqrt(jnp.float32(fan_in))
        w = jax.random.uniform(kw, (fan_in, fan_out), jnp.float32, -bound, bound)
        b = jax.random.uniform(kb, (1, fan_out), jnp.float32, -bound, bound)
        return w, b

    w1r, b1r = lin(ks[0], ks[1], input_dim, hidden_dim)
    w2r, b2r = lin(ks[2], ks[3], hidden_dim, hidden_dim)
    wm, bm = lin(ks[4], ks[5], hidden_dim, output_dim)
    ws, bs = lin(ks[6], ks[7], hidden_dim, output_dim)

    w1 = jnp.zeros((input_dim, h_pad), jnp.float32).at[:, :hidden_dim].set(w1r)
    b1 = jnp.zeros((1, h_pad), jnp.float32).at[:, :hidden_dim].set(b1r)
    w2 = jnp.zeros((h_pad, h_pad), jnp.float32).at[:hidden_dim, :hidden_dim].set(w2r)
    b2 = jnp.zeros((1, h_pad), jnp.float32).at[:, :hidden_dim].set(b2r)
    w3 = (jnp.zeros((h_pad, out_pad), jnp.float32)
          .at[:hidden_dim, :output_dim].set(wm)
          .at[:hidden_dim, output_dim:2 * output_dim].set(ws))
    b3 = (jnp.zeros((1, out_pad), jnp.float32)
          .at[:, :output_dim].set(bm)
          .at[:, output_dim:2 * output_dim].set(bs))

    return {
        "w1": w1.astype(jnp.bfloat16), "b1": b1,
        "w2": w2.astype(jnp.bfloat16), "b2": b2,
        "w3": w3.astype(jnp.bfloat16), "b3": b3,
        "output_dim": output_dim,
        "hidden_dim": hidden_dim,
    }


def _reference_heads(x, params):
    """Pure-JAX reference mimicking the kernel's dtype handling + fused softplus."""
    f32 = jnp.float32
    A = params["output_dim"]
    xb = x.astype(jnp.bfloat16).astype(f32)
    h1 = jnp.maximum(xb @ params["w1"].astype(f32) + params["b1"], 0.0)
    h2 = jnp.maximum(h1.astype(jnp.bfloat16).astype(f32) @ params["w2"].astype(f32)
                     + params["b2"], 0.0)
    head = (h2.astype(jnp.bfloat16).astype(f32) @ params["w3"].astype(f32)
            + params["b3"])
    col = jnp.arange(head.shape[1])
    std_mask = (col >= A) & (col < 2 * A)
    softplus = jnp.maximum(head, 0.0) + jnp.log(1.0 + jnp.exp(-jnp.abs(head)))
    head = jnp.where(std_mask[None, :], softplus, head)
    return head.astype(jnp.bfloat16)


if __name__ == "__main__":
    key = jax.random.PRNGKey(0)
    k_param, k_x, k_sample = jax.random.split(key, 3)

    batch, input_dim, hidden_dim, output_dim = 64, 16, 32, 4
    params = init_params(k_param, input_dim, hidden_dim, output_dim)
    x = jax.random.normal(k_x, (batch, input_dim), jnp.float32)

    # tile_batch=32 -> grid=(2,) to exercise the batch pipeline on small shapes
    head_small_tile = policy_heads(x, params, tile_batch=32)
    jax.block_until_ready(head_small_tile)

    # default (large) tile: whole batch in one grid step
    head = policy_heads(x, params)
    jax.block_until_ready(head)

    # correctness vs pure-JAX reference with identical dtype handling
    ref = _reference_heads(x, params)
    assert jnp.allclose(head.astype(jnp.float32), ref.astype(jnp.float32),
                        atol=2e-2, rtol=2e-2), "kernel mismatch vs ref"
    assert jnp.allclose(head_small_tile.astype(jnp.float32),
                        ref.astype(jnp.float32),
                        atol=2e-2, rtol=2e-2), "tiled kernel mismatch vs ref"

    # eval mode: action means
    means_eval = policy_forward(x, params, training=False)
    jax.block_until_ready(means_eval)
    assert means_eval.shape == (batch, output_dim)

    # training mode: sampled actions + per-dimension log_probs
    actions, log_probs = policy_forward(x, params, training=True, key=k_sample)
    jax.block_until_ready((actions, log_probs))
    assert actions.shape == (batch, output_dim)
    assert log_probs.shape == (batch, output_dim)
    assert bool(jnp.all(jnp.isfinite(log_probs)))

    print("KERNEL_OK")
</pallas_src>

<mosaic_0001>
module attributes {stable_mosaic.version = 11 : i64} {
  func.func @_policy_mlp_kernel(%arg0: i32, %arg1: memref<32x16xbf16, #tpu.memory_space<vmem>>, %arg2: memref<16x128xbf16, #tpu.memory_space<vmem>>, %arg3: memref<1x128xf32, #tpu.memory_space<vmem>>, %arg4: memref<128x128xbf16, #tpu.memory_space<vmem>>, %arg5: memref<1x128xf32, #tpu.memory_space<vmem>>, %arg6: memref<128x128xbf16, #tpu.memory_space<vmem>>, %arg7: memref<1x128xf32, #tpu.memory_space<vmem>>, %arg8: memref<32x128xbf16, #tpu.memory_space<vmem>>) attributes {dimension_semantics = [#tpu.dimension_semantics<parallel>], iteration_bounds = array<i64: 2>, scalar_prefetch = 0 : i64, scratch_operands = 0 : i64, tpu.core_type = #tpu.core_type<tc>, window_params = [{transform_indices = @transform_0, window_bounds = array<i64: 32, 16>}, {pipeline_mode = #tpu.pipeline_mode<synchronous>, transform_indices = @transform_1, window_bounds = array<i64: 16, 128>}, {pipeline_mode = #tpu.pipeline_mode<synchronous>, transform_indices = @transform_2, window_bounds = array<i64: 1, 128>}, {pipeline_mode = #tpu.pipeline_mode<synchronous>, transform_indices = @transform_3, window_bounds = array<i64: 128, 128>}, {pipeline_mode = #tpu.pipeline_mode<synchronous>, transform_indices = @transform_4, window_bounds = array<i64: 1, 128>}, {pipeline_mode = #tpu.pipeline_mode<synchronous>, transform_indices = @transform_5, window_bounds = array<i64: 128, 128>}, {pipeline_mode = #tpu.pipeline_mode<synchronous>, transform_indices = @transform_6, window_bounds = array<i64: 1, 128>}, {transform_indices = @transform_7, window_bounds = array<i64: 32, 128>}]} {
    %c0 = arith.constant 0 : index
    %c0_0 = arith.constant 0 : index
    %0 = vector.load %arg1[%c0, %c0_0] : memref<32x16xbf16, #tpu.memory_space<vmem>>, vector<32x16xbf16>
    %c0_1 = arith.constant 0 : index
    %c0_2 = arith.constant 0 : index
    %1 = vector.load %arg2[%c0_1, %c0_2] : memref<16x128xbf16, #tpu.memory_space<vmem>>, vector<16x128xbf16>
    %cst = arith.constant dense<0.000000e+00> : vector<32x128xf32>
    %2 = tpu.matmul %0, %1, %cst {dimension_numbers = #tpu.dot_dimension_numbers<[1], [0], [0], [1], [0, 0, 1, 1], [], []>} : vector<32x16xbf16>, vector<16x128xbf16>, vector<32x128xf32> -> vector<32x128xf32>
    %c0_3 = arith.constant 0 : index
    %c0_4 = arith.constant 0 : index
    %3 = vector.load %arg3[%c0_3, %c0_4] : memref<1x128xf32, #tpu.memory_space<vmem>>, vector<1x128xf32>
    %4 = vector.broadcast %3 : vector<1x128xf32> to vector<32x128xf32>
    %5 = arith.addf %2, %4 : vector<32x128xf32>
    %cst_5 = arith.constant 0.000000e+00 : f32
    %6 = vector.broadcast %cst_5 : f32 to vector<32x128xf32>
    %7 = arith.maximumf %5, %6 : vector<32x128xf32>
    %8 = arith.truncf %7 : vector<32x128xf32> to vector<32x128xbf16>
    %c0_6 = arith.constant 0 : index
    %c0_7 = arith.constant 0 : index
    %9 = vector.load %arg4[%c0_6, %c0_7] : memref<128x128xbf16, #tpu.memory_space<vmem>>, vector<128x128xbf16>
    %cst_8 = arith.constant dense<0.000000e+00> : vector<32x128xf32>
    %10 = tpu.matmul %8, %9, %cst_8 {dimension_numbers = #tpu.dot_dimension_numbers<[1], [0], [0], [1], [0, 0, 1, 1], [], []>} : vector<32x128xbf16>, vector<128x128xbf16>, vector<32x128xf32> -> vector<32x128xf32>
    %c0_9 = arith.constant 0 : index
    %c0_10 = arith.constant 0 : index
    %11 = vector.load %arg5[%c0_9, %c0_10] : memref<1x128xf32, #tpu.memory_space<vmem>>, vector<1x128xf32>
    %12 = vector.broadcast %11 : vector<1x128xf32> to vector<32x128xf32>
    %13 = arith.addf %10, %12 : vector<32x128xf32>
    %cst_11 = arith.constant 0.000000e+00 : f32
    %14 = vector.broadcast %cst_11 : f32 to vector<32x128xf32>
    %15 = arith.maximumf %13, %14 : vector<32x128xf32>
    %16 = arith.truncf %15 : vector<32x128xf32> to vector<32x128xbf16>
    %c0_12 = arith.constant 0 : index
    %c0_13 = arith.constant 0 : index
    %17 = vector.load %arg6[%c0_12, %c0_13] : memref<128x128xbf16, #tpu.memory_space<vmem>>, vector<128x128xbf16>
    %cst_14 = arith.constant dense<0.000000e+00> : vector<32x128xf32>
    %18 = tpu.matmul %16, %17, %cst_14 {dimension_numbers = #tpu.dot_dimension_numbers<[1], [0], [0], [1], [0, 0, 1, 1], [], []>} : vector<32x128xbf16>, vector<128x128xbf16>, vector<32x128xf32> -> vector<32x128xf32>
    %c0_15 = arith.constant 0 : index
    %c0_16 = arith.constant 0 : index
    %19 = vector.load %arg7[%c0_15, %c0_16] : memref<1x128xf32, #tpu.memory_space<vmem>>, vector<1x128xf32>
    %20 = vector.broadcast %19 : vector<1x128xf32> to vector<32x128xf32>
    %21 = arith.addf %18, %20 : vector<32x128xf32>
    %22 = tpu.iota {dimensions = array<i32: 1>} : vector<32x128xi32>
    %c4_i32 = arith.constant 4 : i32
    %23 = vector.broadcast %c4_i32 : i32 to vector<32x128xi32>
    %24 = arith.cmpi sge, %22, %23 : vector<32x128xi32>
    %c8_i32 = arith.constant 8 : i32
    %25 = vector.broadcast %c8_i32 : i32 to vector<32x128xi32>
    %26 = arith.cmpi slt, %22, %25 : vector<32x128xi32>
    %27 = arith.andi %24, %26 : vector<32x128xi1>
    %cst_17 = arith.constant 0.000000e+00 : f32
    %28 = vector.broadcast %cst_17 : f32 to vector<32x128xf32>
    %29 = arith.maximumf %21, %28 : vector<32x128xf32>
    %30 = math.absf %21 : vector<32x128xf32>
    %cst_18 = arith.constant 0.000000e+00 : f32
    %31 = vector.broadcast %cst_18 : f32 to vector<32x128xf32>
    %32 = arith.subf %31, %30 : vector<32x128xf32>
    %33 = math.exp %32 : vector<32x128xf32>
    %cst_19 = arith.constant 1.000000e+00 : f32
    %34 = vector.broadcast %cst_19 : f32 to vector<32x128xf32>
    %35 = arith.addf %34, %33 : vector<32x128xf32>
    %36 = math.log %35 : vector<32x128xf32>
    %37 = arith.addf %29, %36 : vector<32x128xf32>
    %38 = arith.select %27, %37, %21 : vector<32x128xi1>, vector<32x128xf32>
    %39 = arith.truncf %38 : vector<32x128xf32> to vector<32x128xbf16>
    %c0_20 = arith.constant 0 : index
    %c0_21 = arith.constant 0 : index
    %40 = vector.load %arg8[%c0_20, %c0_21] : memref<32x128xbf16, #tpu.memory_space<vmem>>, vector<32x128xbf16>
    tpu.vector_store %arg8[%c0_20, %c0_21], %39 {strides = array<i32>} : memref<32x128xbf16, #tpu.memory_space<vmem>>, vector<32x128xbf16>,
    return
  }
  func.func @transform_0(%arg0: i32) -> (i32, i32) {
    %c0_i32 = arith.constant 0 : i32
    %c0_i32_0 = arith.constant 0 : i32
    return %arg0, %c0_i32 : i32, i32
  }
  func.func @transform_1(%arg0: i32) -> (i32, i32) {
    %c0_i32 = arith.constant 0 : i32
    %c0_i32_0 = arith.constant 0 : i32
    %c0_i32_1 = arith.constant 0 : i32
    return %c0_i32, %c0_i32_0 : i32, i32
  }
  func.func @transform_2(%arg0: i32) -> (i32, i32) {
    %c0_i32 = arith.constant 0 : i32
    %c0_i32_0 = arith.constant 0 : i32
    %c0_i32_1 = arith.constant 0 : i32
    return %c0_i32, %c0_i32_0 : i32, i32
  }
  func.func @transform_3(%arg0: i32) -> (i32, i32) {
    %c0_i32 = arith.constant 0 : i32
    %c0_i32_0 = arith.constant 0 : i32
    %c0_i32_1 = arith.constant 0 : i32
    return %c0_i32, %c0_i32_0 : i32, i32
  }
  func.func @transform_4(%arg0: i32) -> (i32, i32) {
    %c0_i32 = arith.constant 0 : i32
    %c0_i32_0 = arith.constant 0 : i32
    %c0_i32_1 = arith.constant 0 : i32
    return %c0_i32, %c0_i32_0 : i32, i32
  }
  func.func @transform_5(%arg0: i32) -> (i32, i32) {
    %c0_i32 = arith.constant 0 : i32
    %c0_i32_0 = arith.constant 0 : i32
    %c0_i32_1 = arith.constant 0 : i32
    return %c0_i32, %c0_i32_0 : i32, i32
  }
  func.func @transform_6(%arg0: i32) -> (i32, i32) {
    %c0_i32 = arith.constant 0 : i32
    %c0_i32_0 = arith.constant 0 : i32
    %c0_i32_1 = arith.constant 0 : i32
    return %c0_i32, %c0_i32_0 : i32, i32
  }
  func.func @transform_7(%arg0: i32) -> (i32, i32) {
    %c0_i32 = arith.constant 0 : i32
    %c0_i32_0 = arith.constant 0 : i32
    return %arg0, %c0_i32 : i32, i32
  }
}

</mosaic_0001>

<bundles_post_ra>
// kernel: tpu_custom_call.1
= control target key start
LH: loop header
LB: loop body
LE: loop exit
PB: predicated region body
PF: predicated region fallthrough
CT: control target
= control target key end

     0   :  { %12 = vsyncpa [#allocation3], 0  ;;  %s1426_s0 = inlined_call_operand.vmem [shape: bf16[64,16], index: 0, kind: input, shape index: {}]   ;;  %s1427_s1 = inlined_call_operand.vmem [shape: bf16[16,128], index: 1, kind: input, shape index: {}]   ;;  %s1428_s2 = inlined_call_operand.vmem [shape: f32[1,128], index: 2, kind: input, shape index: {}]   ;;  %s1429_s3 = inlined_call_operand.hbm [shape: bf16[128,128], index: 3, kind: input, shape index: {}]   ;;  %s1430_s4 = inlined_call_operand.vmem [shape: f32[1,128], index: 4, kind: input, shape index: {}]   ;;  %s1431_s5 = inlined_call_operand.hbm [shape: bf16[128,128], index: 5, kind: input, shape index: {}]   ;;  %s1432_s6 = inlined_call_operand.vmem [shape: f32[1,128], index: 6, kind: input, shape index: {}]   ;;  %s1433_s7 = inlined_call_operand.hbm [shape: bf16[64,128], index: 7, kind: output, shape index: {}]  }
   0x1   :  { %13 = vsyncpa [#allocation6], 0 }
   0x2   :  { %14 = vsyncpa [#allocation4], 0 }
   0x3   :  { %16 = vsyncpa [#allocation4 + $0x1], 0  ;;  %s1214_s24 = smov 0   ;;  %s1216_s25 = smov 0  }
   0x4   :  { %s1218_s26 = smov 0   ;;  %s1220_s27 = smov 0  }
   0x5 LB: > { %s1235_s28 = sadd.s32 4294967295, %s1165_s27   ;;  %s811_s29 = sadd.s32 4294967294, %s1165_s27   ;;  %s1165_s27 = sphi %s1220_s27, %s1455_s27   ;;  %s1161_s26 = sphi %s1218_s26, %s1454_s26   ;;  %s1157_s25 = sphi %s1216_s25, %s1453_s25   ;;  %s1153_s24 = sphi %s1214_s24, %s1452_s24  }
   0x6   : > { %s1239_s30 = sadd.s32 1, %s1165_s27   ;;  %s181_s8 = sadd.s32 1, %s1161_s26 }
   0x7   : > { %s178_s9 = ssub.s32 %s1165_s27, %s1239_s30  ;;  %p191_p0 = scmp.ne.s32.totalorder %s1161_s26, %s1157_s25 }
   0x8   : > { %p179_p1 = scmp.eq.s32.totalorder %s178_s9, 0  ;;  %p192_p2 = scmp.eq.s32.totalorder %s1235_s28, 1 }
   0x9   : > { %p197_p3 = scmp.ne.s32.totalorder %s1157_s25, %s1153_s24  ;;  %p198_p4 = scmp.eq.s32.totalorder %s811_s29, 1 }
   0xa   : > { %s1250_s10 = scalar_select %p179_p1, %s1161_s26, %s181_s8  }
   0xb   : > { %p1252_p5 = por %p192_p2, %p191_p0  ;;  %p1256_p6 = por %p198_p4, %p197_p3 }
   0xc   : > { %1437 = sst [smem:[#allocation11_spill]] %s1250_s10  ;;  %p812_p7 = scmp.ge.s32.totalorder %s1165_s27, 1 }
   0xd   : > { %s1438_s11 = scalar_select %p1252_p5, 1, 0 }
   0xe   : > { %s1439_s12 = scalar_select %p1256_p6, 1, 0 }
   0xf   : > { %p205_p8 = scmp.lt.s32.totalorder %s1165_s27, 3  ;;  %p1434_p9 = scmp.eq.s32.totalorder %s1235_s28, 0 }
  0x10   : > { %s1167_s14 = smov [#allocation2]   ;;  %s1168_s17 = smov [#allocation5]  }
  0x11   : > { %p1263_p10 = pnand %p812_p7, %p205_p8  ;;  %s223_s15 = sshll.u32 %s1167_s14, 4  ;;  %s224_s15 = int_to_ptr.vmem [resolvable:$true] %s223_s15 }
  0x12   : > { %s239_s18 = sshll.u32 %s1168_s17, 4  ;;  %s1039_s21 = scalar_lea.hbm %s1429_s3, 1024  ;;  %s1275_s18 = int_to_ptr.vmem [resolvable:$true] %s239_s18 }
  0x13   : > { %s1440_s13 = scalar_select %p1263_p10, 1, 0 }
  0x14   : > { %p950_p11 = pneg %p1263_p10  ;;  %p1040_p13 = scmp.ne.s32.totalorder %s1429_s3, %s1039_s21 }
  0x15   : > { %p1046_p3 = scmp.lt.u32.totalorder %s1039_s21, %s1429_s3 }
  0x16   : > { %p1271_p12 = pnand %p1434_p9, %p950_p11 }
  0x18   : > { %p1041_p0 = pneg %p1271_p12 }
  0x1a   : > { %p1042_p1 = pnand %p1041_p0, %p1040_p13 }
  0x1c   : > { %p1043_p2 = pneg %p1042_p1 }
  0x1e   : > { %p1048_p4 = pnand %p1046_p3, %p1043_p2 }
  0x20   : > { %1051 = shalt.err (!%p1048_p4)
}
  0x21   : > { %s1052_s9 = scalar_lea.vmem %s224_s15, 1024  ;;  %p1060_p9 = scmp.lt.s32.totalorder %s224_s15, %s224_s15 }
  0x22   : > { %p1053_p7 = scmp.ne.s32.totalorder %s224_s15, %s1052_s9  ;;  %p1061_p6 = scmp.lt.s32.totalorder %s1052_s9, %s1052_s9 }
  0x24   : > { %p1055_p8 = pnand %p1053_p7, %p1041_p0  ;;  %p1062_p5 = por %p1061_p6, %p1060_p9 }
  0x26   : > { %p1056_p11 = pneg %p1055_p8 }
  0x28   : > { %p1063_p10 = pnand %p1062_p5, %p1056_p11 }
  0x2a   : > { %1066 = shalt.err (!%p1063_p10)
}
  0x2b   : > { %s1169_s14 = smov 64   ;;  %s1170_s17 = smov 4  }
  0x2c   : > { %953 = dma.hbm_to_vmem [thread:$0]  (!%p1271_p12), %s1429_s3, 1024, %s224_s15, [#allocation3], %s1169_s14, %s1169_s14, %s1170_s17  }
  0x2d   : > { %s1067_s23 = scalar_lea.hbm %s1431_s5, 1024 }
  0x2e   : > { %p1068_p13 = scmp.ne.s32.totalorder %s1431_s5, %s1067_s23  ;;  %p1074_p9 = scmp.lt.u32.totalorder %s1067_s23, %s1431_s5 }
  0x30   : > { %p1070_p5 = pnand %p1068_p13, %p1041_p0 }
  0x32   : > { %p1071_p6 = pneg %p1070_p5 }
  0x34   : > { %p1076_p10 = pnand %p1074_p9, %p1071_p6 }
  0x36   : > { %1079 = shalt.err (!%p1076_p10)
}
  0x37   : > { %s1080_s15 = scalar_lea.vmem %s1275_s18, 1024  ;;  %p1088_p4 = scmp.lt.s32.totalorder %s1275_s18, %s1275_s18 }
  0x38   : > { %p1081_p1 = scmp.ne.s32.totalorder %s1275_s18, %s1080_s15  ;;  %p1089_p7 = scmp.lt.s32.totalorder %s1080_s15, %s1080_s15 }
  0x3a   : > { %p1083_p2 = pnand %p1081_p1, %p1041_p0  ;;  %p1090_p8 = por %p1089_p7, %p1088_p4 }
  0x3c   : > { %p1084_p3 = pneg %p1083_p2 }
  0x3e   : > { %p1091_p11 = pnand %p1090_p8, %p1084_p3 }
  0x40   : > { %1094 = shalt.err (!%p1091_p11)
}
  0x41   : > { %956 = dma.hbm_to_vmem [thread:$0]  (!%p1271_p12), %s1431_s5, 1024, %s1275_s18, [#allocation6], %s1169_s14, %s1169_s14, %s1170_s17  }
  0x42   : > { %p1442_p13 = scmp.ne.s32.totalorder %s1440_s13, 0 }
  0x43   : > { %p1443_p5 = scmp.eq.s32.totalorder (!%p1442_p13), %s1235_s28, 0 }
  0x44   : > { %267 = sbr.rel (%p1442_p13) target bundleno = 801 (0x321), region = 48 }
  0x4b   : > { %1140 = dma.done.wait (%p1443_p5), [#allocation3], 1024   ;;  %p1444_p0 = pmov %p1443_p5 }
  0x4d   : > { %1142 = vsyncadd (%p1444_p0), [#allocation3], 4294966272  ;;  %p1445_p6 = pmov %p1444_p0 }
  0x4e   : > { %p1446_p9 = pmov %p1444_p0 }
  0x4f   : > { %1144 = dma.done.wait (%p1445_p6), [#allocation6], 1024  }
  0x50   : > { %1146 = vsyncadd (%p1446_p9), [#allocation6], 4294966272  ;;  %s820_s16 = sshll.u32 %s1235_s28, 2  ;;  %v1004_v0 = vld [vmem:[%s1427_s1] sm:$0xff]   ;;  %vm340_vm0 = vcmask 130048   ;;  %v1008_v4 = vld [vmem:[#allocation2 + $0x8] sm:$0xff]  }
  0x51   : > { %p304_p10 = scmp.lt.s32.totalorder %s820_s16, 7  ;;  %894 = vmatprep.subr.bf16.mxu0 %v1004_v0  ;;  %v1007_v3 = vld [vmem:[#allocation2] sm:$0xff]   ;;  %v1009_v5 = vld [vmem:[#allocation2 + $0x10] sm:$0xff]   ;;  %v1010_v6 = vld [vmem:[#allocation2 + $0x18] sm:$0xff]   ;;  %s300_s10 = sand.u32 1, %s1157_s25  }
  0x52   : > { %895 = vmatpush3.bf16.msra.mxu0 %v1004_v0  ;;  %900 = vmatprep.subr.bf16.mxu1 %v1007_v3  ;;  %v1011_v7 = vld [vmem:[#allocation2 + $0x20] sm:$0xff]   ;;  %v1012_v8 = vld [vmem:[#allocation2 + $0x28] sm:$0xff]   ;;  %v1013_v9 = vld [vmem:[#allocation2 + $0x30] sm:$0xff]   ;;  %s819_s19 = sshll.u32 %s300_s10, 4  ;;  %s859_s14 = sshll.u32 %s1235_s28, 8 }
  0x53   : > { %s1457_s16 = smov (!%p304_p10, %s820_s16), 7  ;;  %901 = vmatpush3.bf16.msra.mxu1 %v1007_v3  ;;  %v1014_v10 = vld [vmem:[#allocation2 + $0x38] sm:$0xff]   ;;  %v1015_v11 = vld [vmem:[#allocation5] sm:$0xff]   ;;  %v1016_v12 = vld [vmem:[#allocation5 + $0x8] sm:$0xff]   ;;  %s1385_s20 = scalar_lea.sflag [#allocation4], %s300_s10 }
  0x54   : > { %s821_s18 = sshll.u32 %s1457_s16, 2  ;;  %902 = vmatprep.subr.bf16.mxu1 %v1008_v4  ;;  %920 = vmatprep.subr.bf16.mxu0 %v1015_v11  ;;  %v1017_v13 = vld [vmem:[#allocation5 + $0x10] sm:$0xff]   ;;  %v1018_v14 = vld [vmem:[#allocation5 + $0x18] sm:$0xff]   ;;  %v1019_v15 = vld [vmem:[#allocation5 + $0x20] sm:$0xff]   ;;  %s302_s16 = scalar_lea.vmem [#allocation7], %s819_s19 }
  0x55   : > { %s307_s17 = scalar_lea.vmem %s1426_s0, %s821_s18  ;;  %v1020_v16 = vld [vmem:[#allocation5 + $0x28] sm:$0xff]   ;;  %v822_v17 = vld [vmem:[%s1428_s2] ss:$0 sm:$0xff]  ;;  %v1021_v32 = vld [vmem:[#allocation5 + $0x30] sm:$0xff]   ;;  %s727_s18 = sshll.u32 %s302_s16, 4  ;;  %s1374_s18 = int_to_ptr.vmem [resolvable:$true] %s727_s18 }
  0x56   : > { %v1005_v1 = vld [vmem:[%s307_s17] sm:$0xff]   ;;  %v1006_v2 = vld [vmem:[%s307_s17 + $0x8] sm:$0xff]   ;;  %v1022_v33 = vld [vmem:[#allocation5 + $0x38] sm:$0xff]   ;;  %s1381_s17 = scalar_lea.hbm %s1433_s7, %s859_s14  ;;  %s1095_s21 = scalar_lea.vmem %s1374_s18, 256 }
  0x57   : > { %896 = vmatprep.mubr.msk.bf16.mxu0 %vm340_vm0, %v1005_v1  ;;  %903 = vmatpush3.bf16.msra.mxu1 %v1008_v4  ;;  %v828_v34 = vld [vmem:[%s1430_s4] ss:$0 sm:$0xff]  ;;  %p1096_p12 = scmp.ne.s32.totalorder %s1374_s18, %s1095_s21  ;;  %p1449_p1 = scmp.ne.s32.totalorder %s1438_s11, 0 }
  0x58   : > { %897 = vmatmul.mubr.msk.bf16.vlgmr.msra.gmra.mrb[0].mxu0 %vm340_vm0, %v1006_v2  ;;  %904 = vmatprep.subr.bf16.mxu1 %v1009_v5  ;;  %v837_v49 = vld [vmem:[%s1432_s6] ss:$0 sm:$0xff]  ;;  %s1171_s22 = smov [#allocation7]  }
  0x59   : > { %921 = vmatpush3.bf16.msra.mxu0 %v1015_v11  ;;  %p1097_p2 = pnand %p1096_p12, %p1449_p1  ;;  %s1099_s23 = sshll.u32 %s1171_s22, 4  ;;  %s1100_s23 = int_to_ptr.vmem [resolvable:$false] %s1099_s23 }
  0x5a   : > { %922 = vmatprep.subr.bf16.mxu0 %v1016_v12  ;;  %s1101_s29 = scalar_lea.vmem %s1100_s23, 512  ;;  %p1102_p4 = scmp.lt.s32.totalorder %s1374_s18, %s1100_s23 }
  0x5b   : > { %905 = vmatpush3.bf16.msra.mxu1 %v1009_v5  ;;  %p1098_p3 = pneg %p1097_p2  ;;  %p1103_p7 = scmp.lt.s32.totalorder %s1101_s29, %s1095_s21 }
  0x5c   : > { %906 = vmatprep.subr.bf16.mxu1 %v1010_v6 }
  0x5d   : > { %923 = vmatpush3.bf16.msra.mxu0 %v1016_v12  ;;  %p1104_p8 = por %p1103_p7, %p1102_p4 }
  0x5e   : > { %924 = vmatprep.subr.bf16.mxu0 %v1017_v13 }
  0x5f   : > { %907 = vmatpush3.bf16.msra.mxu1 %v1010_v6  ;;  %p1105_p11 = pnand %p1104_p8, %p1098_p3 }
  0x60   : > { %908 = vmatprep.subr.bf16.mxu1 %v1011_v7 }
  0x61   : > { %925 = vmatpush3.bf16.msra.mxu0 %v1017_v13 }
  0x62   : > { %926 = vmatprep.subr.bf16.mxu0 %v1018_v14 }
  0x63   : > { %909 = vmatpush3.bf16.msra.mxu1 %v1011_v7 }
  0x64   : > { %910 = vmatprep.subr.bf16.mxu1 %v1012_v8 }
  0x65   : > { %927 = vmatpush3.bf16.msra.mxu0 %v1018_v14  ;;  %v648_v14 = vlaneseq }
  0x66   : > { %928 = vmatprep.subr.bf16.mxu0 %v1019_v15 }
  0x67   : > { %911 = vmatpush3.bf16.msra.mxu1 %v1012_v8 }
  0x68   : > { %912 = vmatprep.subr.bf16.mxu1 %v1013_v9 }
  0x69   : > { %929 = vmatpush3.bf16.msra.mxu0 %v1019_v15  ;;  %v649_v15 = vand.u32 127, %v648_v14 }
  0x6a   : > { %930 = vmatprep.subr.bf16.mxu0 %v1020_v16 }
  0x6b   : > { %913 = vmatpush3.bf16.msra.mxu1 %v1013_v9  ;;  %vm650_vm1 = vcmp.ge.s32.totalorder %v649_v15, 4  ;;  %vm651_vm2 = vcmp.lt.s32.totalorder %v649_v15, 8 }
  0x6c   : > { %914 = vmatprep.subr.bf16.mxu1 %v1014_v10  ;;  %vm1361_vm3 = vmand %vm650_vm1, %vm651_vm2 }
  0x6d   : > { %931 = vmatpush3.bf16.msra.mxu0 %v1020_v16 }
  0x6e   : > { %932 = vmatprep.subr.bf16.mxu0 %v1021_v32 }
  0x6f   : > { %915 = vmatpush3.bf16.msra.mxu1 %v1014_v10 }
  0x71   : > { %933 = vmatpush3.bf16.msra.mxu0 %v1021_v32 }
  0x72   : > { %934 = vmatprep.subr.bf16.mxu0 %v1022_v33 }
  0x75   : > { %935 = vmatpush3.bf16.msra.mxu0 %v1022_v33 }
 0x12b   : > { %v898_v18 = vpop.f32.mrb[0].mxu0 }
 0x12c   : > { %v390_v19 = vadd.f32 %v898_v18, %v822_v17  ;;  %v381_v20 = vpop.f32.mrb[1].mxu0 }
 0x12d   : > { %v382_v21 = vadd.f32 %v822_v17, %v381_v20  ;;  %v899_v22 = vpop.f32.mrb[2].mxu0 }
 0x12e   : > { %v393_v23 = vadd.f32 %v899_v22, %v822_v17  ;;  %v384_v24 = vpop.f32.mrb[3].mxu0  ;;  %v398_v26 = vmax.f32 %v390_v19, 0.0 }
 0x12f   : > { %v385_v25 = vadd.f32 %v822_v17, %v384_v24  ;;  %v396_v28 = vmax.f32 %v382_v21, 0.0 }
 0x130   : > { %v399_v27 = vmax.f32 %v393_v23, 0.0 }
 0x131   : > { %v397_v29 = vmax.f32 %v385_v25, 0.0 }
 0x132   : > { %v401_v30 = vpack.c.bf16 %v399_v27, %v398_v26 }
 0x133   : > { %v400_v31 = vpack.c.bf16 %v397_v29, %v396_v28 }
 0x135   : > { %916 = vmatprep.mubr.bf16.mxu1 %v400_v31 }
 0x136   : > { %917 = vmatmul.mubr.bf16.vlgmr.msra.gmra.mrb[0].mxu1 %v401_v30 }
 0x209   : > { %v918_v35 = vpop.f32.mrb[0].mxu1 }
 0x20a   : > { %v516_v36 = vadd.f32 %v918_v35, %v828_v34  ;;  %v507_v37 = vpop.f32.mrb[1].mxu1 }
 0x20b   : > { %v508_v38 = vadd.f32 %v828_v34, %v507_v37  ;;  %v919_v39 = vpop.f32.mrb[2].mxu1 }
 0x20c   : > { %v519_v40 = vadd.f32 %v919_v39, %v828_v34  ;;  %v510_v41 = vpop.f32.mrb[3].mxu1  ;;  %v524_v43 = vmax.f32 %v516_v36, 0.0 }
 0x20d   : > { %v511_v42 = vadd.f32 %v828_v34, %v510_v41  ;;  %v522_v45 = vmax.f32 %v508_v38, 0.0 }
 0x20e   : > { %v525_v44 = vmax.f32 %v519_v40, 0.0 }
 0x20f   : > { %v523_v46 = vmax.f32 %v511_v42, 0.0 }
 0x210   : > { %v527_v47 = vpack.c.bf16 %v525_v44, %v524_v43 }
 0x211   : > { %v526_v48 = vpack.c.bf16 %v523_v46, %v522_v45 }
 0x213   : > { %936 = vmatprep.mubr.bf16.mxu0 %v526_v48 }
 0x214   : > { %937 = vmatmul.mubr.bf16.vlgmr.msra.gmra.mrb[4].mxu0 %v527_v47 }
 0x2e7   : > { %v938_v50 = vpop.f32.mrb[4].mxu0 }
 0x2e8   : > { %v1350_v51 = vadd.f32 %v938_v50, %v837_v49  ;;  %v633_v52 = vpop.f32.mrb[5].mxu0 }
 0x2e9   : > { %v1352_v53 = vadd.f32 %v837_v49, %v633_v52  ;;  %v939_v54 = vpop.f32.mrb[6].mxu0 }
 0x2ea   : > { %v659_v55 = vand.u32 2147483647, %v1350_v51  ;;  %v645_v56 = vadd.f32 %v939_v54, %v837_v49  ;;  %v636_v57 = vpop.f32.mrb[7].mxu0  ;;  %v655_v18 = vmax.f32 %v1350_v51, 0.0 }
 0x2eb   : > { %v657_v58 = vand.u32 2147483647, %v1352_v53  ;;  %v637_v59 = vadd.f32 %v837_v49, %v636_v57  ;;  %v653_v21 = vmax.f32 %v1352_v53, 0.0 }
 0x2ec   : > { %v663_v60 = vsub.f32 0.0, %v659_v55  ;;  %v660_v61 = vand.u32 2147483647, %v645_v56  ;;  %v656_v25 = vmax.f32 %v645_v56, 0.0 }
 0x2ed   : > { %v661_v62 = vsub.f32 0.0, %v657_v58  ;;  %v658_v63 = vand.u32 2147483647, %v637_v59  ;;  %v654_v29 = vmax.f32 %v637_v59, 0.0 }
 0x2ee   : > { %v669_v0 = vmul.f32 1.442695, %v663_v60  ;;  %v664_v1 = vsub.f32 0.0, %v660_v61 }
 0x2ef   : > { %v665_v2 = vmul.f32 1.442695, %v661_v62  ;;  %v662_v3 = vsub.f32 0.0, %v658_v63 }
 0x2f0   : > { %1023 = vpow2.f32 %v669_v0  ;;  %v671_v4 = vmul.f32 1.442695, %v664_v1 }
 0x2f1   : > { %1025 = vpow2.f32 %v665_v2  ;;  %v667_v5 = vmul.f32 1.442695, %v662_v3 }
 0x2f2   : > { %1027 = vpow2.f32 %v671_v4 }
 0x2f3   : > { %1029 = vpow2.f32 %v667_v5 }
 0x2fa   : > { %v1024_v6 = vpop.eup %1023 }
 0x2fb   : > { %v1026_v7 = vpop.eup %1025  ;;  %v675_v8 = vadd.f32 1.0, %v1024_v6 }
 0x2fc   : > { %v1028_v9 = vpop.eup %1027  ;;  %v673_v10 = vadd.f32 1.0, %v1026_v7 }
 0x2fd   : > { %v1030_v11 = vpop.eup %1029  ;;  %1031 = vlog2.f32 %v675_v8  ;;  %v676_v12 = vadd.f32 1.0, %v1028_v9 }
 0x2fe   : > { %1033 = vlog2.f32 %v673_v10  ;;  %v674_v13 = vadd.f32 1.0, %v1030_v11 }
 0x2ff   : > { %1035 = vlog2.f32 %v676_v12 }
 0x300   : > { %1037 = vlog2.f32 %v674_v13 }
 0x307   : > { %v1032_v16 = vpop.eup %1031 }
 0x308   : > { %v1034_v17 = vpop.eup %1033  ;;  %v682_v19 = vmul.f32 0.6931472, %v1032_v16 }
 0x309   : > { %v1036_v20 = vpop.eup %1035  ;;  %v678_v22 = vmul.f32 0.6931472, %v1034_v17 }
 0x30a   : > { %v1038_v23 = vpop.eup %1037  ;;  %v687_v24 = vadd.f32 %v682_v19, %v655_v18  ;;  %v684_v26 = vmul.f32 0.6931472, %v1036_v20 }
 0x30b   : > { %v685_v28 = vadd.f32 %v678_v22, %v653_v21  ;;  %v680_v30 = vmul.f32 0.6931472, %v1038_v23 }
 0x30c   : > { %v688_v31 = vadd.f32 %v684_v26, %v656_v25  ;;  %v691_v33 = vsel %vm1361_vm3, %v687_v24, %v1350_v51 }
 0x30d   : > { %v686_v32 = vadd.f32 %v680_v30, %v654_v29  ;;  %v689_v35 = vsel %vm1361_vm3, %v685_v28, %v1352_v53 }
 0x30e   : > { %v692_v34 = vsel %vm1361_vm3, %v688_v31, %v645_v56 }
 0x30f   : > { %v868_v36 = vpack.c.bf16 %v692_v34, %v691_v33  ;;  %v690_v37 = vsel %vm1361_vm3, %v686_v32, %v637_v59 }
 0x310   : > { %v863_v38 = vpack.c.bf16 %v690_v37, %v689_v35 }
 0x311   : > { %870 = vst [vmem:[%s302_s16 + $0x8] sm:$0xff] %v868_v36  }
 0x312   : > { %864 = vst [vmem:[%s302_s16] sm:$0xff] %v863_v38  }
 0x313   : > { %1108 = shalt.err (!%p1105_p11)
}
 0x314   : > { %s1109_s8 = scalar_lea.hbm %s1381_s17, 256  ;;  %s1113_s10 = scalar_lea.hbm %s1433_s7, 512 }
 0x315   : > { %p1110_p13 = scmp.ne.s32.totalorder %s1381_s17, %s1109_s8  ;;  %p1114_p6 = scmp.lt.u32.totalorder %s1381_s17, %s1433_s7 }
 0x316   : > { %p1115_p9 = scmp.lt.u32.totalorder %s1113_s10, %s1109_s8  ;;  %p1117_p12 = scmp.lt.u32.totalorder %s1109_s8, %s1381_s17 }
 0x317   : > { %p1111_p5 = pnand %p1110_p13, %p1449_p1 }
 0x318   : > { %p1116_p10 = por %p1115_p9, %p1114_p6 }
 0x319   : > { %p1112_p0 = pneg %p1111_p5 }
 0x31a   : > { %p1118_p2 = por %p1117_p12, %p1116_p10 }
 0x31c   : > { %p1119_p3 = pnand %p1118_p2, %p1112_p0 }
 0x31e   : > { %1122 = shalt.err (!%p1119_p3)
}
 0x31f   : > { %s1172_s14 = smov 64   ;;  %s1173_s28 = smov 4  }
 0x320   : > { %948 = dma.vmem_to_hbm [thread:$0]  (%p1449_p1), %s1374_s18, 256, %s1381_s17, %s1385_s20, %s1172_s14, %s1172_s14, %s1173_s28  }
 0x321 PF: > { %p965_p4 = scmp.ge.s32.totalorder %s1165_s27, 2  ;;  %s742_s13 = sand.u32 1, %s1153_s24  }
 0x322   : > { %p1450_p7 = scmp.ne.s32.totalorder %s1439_s12, 0  ;;  %s743_s21 = scalar_lea.sflag [#allocation4], %s742_s13 }
 0x324   : > { %p958_p8 = pnand %p965_p4, %p1450_p7 }
 0x326   : > { %1148 = dma.done.wait (!%p958_p8), %s743_s21, 256  }
 0x327   : > { %1150 = vsyncadd (!%p958_p8), %s743_s21, 4294967040  ;;  %s1451_s22 = sld [smem:[#allocation11_spill]]  ;;  %p19_p11 = scmp.ge.s32.totalorder %s1239_s30, 4  }
 0x328   : > { %s1452_s24 = smov %s1157_s25  ;;  %s1453_s25 = smov %s1161_s26 }
 0x329   : > { %s1455_s27 = smov %s1239_s30  ;;  %21 = sbr.rel (!%p19_p11) target bundleno = 5 (0x5), region = 92 }
 0x32d   : > { %s1454_s26 = smov %s1451_s22 }
 0x330   :  { %748 = vsyncpa [#allocation3], 1 }
 0x331   :  { %750 = vsyncpa [#allocation3 + $0x1], 1 }
 0x332   :  { %751 = vsyncpa [#allocation6], 1 }
 0x333   :  { %752 = vsyncpa [#allocation4], 1 }
 0x334   :  { %754 = vsyncpa [#allocation4 + $0x1], 1 }

</bundles_post_ra>
